<compile_context>
chip_gen: v6e
topology: v6e:2x2x1
jax: 0.10.0
libtpu: 0.0.40
codegen_flags: <defaults>
</compile_context>

<pallas_src>
import jax
import jax.numpy as jnp
from jax.experimental import pallas as pl
from jax.experimental.pallas import tpu as pltpu

_LANE = 128
_MAX_COLS = 32768            # widest lane-dense slab column count considered
_MIN_CHUNK_BYTES = 4 << 20   # per-DMA chunk target (amortizes DMA issue cost)
_MAX_CHUNKS = 64             # bound on the statically unrolled DMA loop
_NSEM = 4                    # max outstanding HBM->HBM copies


def _flat_size(shape) -> int:
    n = 1
    for d in shape[1:]:
        n *= d
    return n


def _pick_slab_cols(total: int) -> int:
    """Largest multiple-of-128 divisor of `total` that is <= _MAX_COLS (0 if none)."""
    best = 0
    c = _LANE
    limit = min(total, _MAX_COLS)
    while c <= limit:
        if total % c == 0:
            best = c
        c += _LANE
    return best


def _pick_chunk_rows(rows: int, row_bytes: int) -> int:
    """Smallest divisor of `rows` giving chunks >= _MIN_CHUNK_BYTES and at most
    _MAX_CHUNKS chunks; falls back to a single whole-array DMA."""
    lo = max(1,
             -(-_MIN_CHUNK_BYTES // row_bytes),   # ceil(MIN_BYTES / row_bytes)
             -(-rows // _MAX_CHUNKS))             # ceil(rows / MAX_CHUNKS)
    for d in range(lo, rows + 1):
        if rows % d == 0:
            return d
    return rows


def _make_hbm_copy_kernel(chunk_rows: int, n_chunks: int, n_sems: int):
    """Kernel: chunked HBM->HBM DMA with up to `n_sems` outstanding copies."""

    def kernel(x_hbm, o_hbm, sems):
        def copy_desc(c):
            start = c * chunk_rows            # Python int -> static slice
            return pltpu.make_async_copy(
                x_hbm.at[pl.ds(start, chunk_rows)],
                o_hbm.at[pl.ds(start, chunk_rows)],
                sems.at[c % n_sems],
            )

        # Prime the DMA queue with up to n_sems outstanding copies.
        for c in range(min(n_sems, n_chunks)):
            copy_desc(c).start()
        # Retire in order; keep the queue full.
        for c in range(n_chunks):
            copy_desc(c).wait()
            nxt = c + n_sems
            if nxt < n_chunks:
                copy_desc(nxt).start()

    return kernel


def resize_forward(x, *, materialize: bool = False):
    """Pallas/JAX equivalent of Resize.forward: x -> x.reshape(B, -1).

    Default path is the free metadata-only reshape (no kernel, no bytes moved).
    `materialize=True` produces a freshly materialized HBM buffer via a
    Pallas kernel doing chunked HBM->HBM DMA (no VMEM staging).
    """
    b = x.shape[0]
    flat = _flat_size(x.shape)

    if not materialize:
        # Optimal path: a row-major flatten is a pure view.
        return x.reshape(b, flat)

    total = b * flat
    itemsize = jnp.dtype(x.dtype).itemsize
    cols = _pick_slab_cols(total)
    if cols == 0:
        # Not factorizable into a lane-aligned slab: materializing buys
        # nothing, return the free metadata reshape.
        return x.reshape(b, flat)

    rows = total // cols
    chunk_rows = _pick_chunk_rows(rows, cols * itemsize)
    n_chunks = rows // chunk_rows
    n_sems = max(1, min(_NSEM, n_chunks))
    nbytes = total * itemsize

    # Free metadata view of the contiguous buffer as a lane-dense 2-D slab.
    x_slab = x.reshape(rows, cols)

    out_slab = pl.pallas_call(
        _make_hbm_copy_kernel(chunk_rows, n_chunks, n_sems),
        out_shape=jax.ShapeDtypeStruct((rows, cols), x.dtype),
        in_specs=[pl.BlockSpec(memory_space=pl.ANY)],   # raw HBM ref, no auto-DMA
        out_specs=pl.BlockSpec(memory_space=pl.ANY),    # written via explicit DMA
        scratch_shapes=[pltpu.SemaphoreType.DMA((n_sems,))],
        compiler_params=pltpu.CompilerParams(has_side_effects=True),
        cost_estimate=pl.CostEstimate(
            flops=0, transcendentals=0, bytes_accessed=2 * nbytes),
    )(x_slab)

    # Free metadata reshape back to the module's (B, C*H*W) output.
    return out_slab.reshape(b, flat)


if __name__ == "__main__":
    key = jax.random.PRNGKey(0)

    # Small NCHW input consistent with the module's usage.
    x = jax.random.normal(key, (2, 4, 16, 16), dtype=jnp.float32)
    ref = x.reshape(x.shape[0], -1)

    # Default (optimal) path: free metadata reshape, no kernel launched.
    out_view = jax.block_until_ready(resize_forward(x))
    assert out_view.shape == (2, 4 * 16 * 16), out_view.shape
    assert bool(jnp.array_equal(out_view, ref))

    # Materializing path: chunked HBM->HBM DMA Pallas kernel.
    out_mat = jax.block_until_ready(resize_forward(x, materialize=True))
    assert out_mat.shape == (2, 4 * 16 * 16), out_mat.shape
    assert out_mat.dtype == x.dtype
    assert bool(jnp.array_equal(out_mat, ref))

    # Non-lane-divisible shape exercises the metadata-only fallback.
    x2 = jax.random.normal(key, (2, 3, 5, 7), dtype=jnp.float32)
    out2 = jax.block_until_ready(resize_forward(x2, materialize=True))
    assert out2.shape == (2, 3 * 5 * 7)
    assert bool(jnp.array_equal(out2, x2.reshape(2, -1)))

    print("KERNEL_OK")
</pallas_src>

<mosaic_0001>
module attributes {stable_mosaic.version = 11 : i64} {
  func.func @kernel(%arg0: memref<1x2048xf32, #tpu.memory_space<any>>, %arg1: memref<1x2048xf32, #tpu.memory_space<any>>, %arg2: memref<1x!tpu.dma_semaphore, #tpu.memory_space<semaphore_mem>>) attributes {dimension_semantics = [], scalar_prefetch = 0 : i64, scratch_operands = 1 : i64, tpu.core_type = #tpu.core_type<tc>} {
    %c0_i32 = arith.constant 0 : i32
    %c0_i32_0 = arith.constant 0 : i32
    %c0_i32_1 = arith.constant 0 : i32
    %0 = tpu.memref_slice %arg0[%c0_i32_0, %c0_i32_1] : memref<1x2048xf32, #tpu.memory_space<any>> -> memref<1x2048xf32, #tpu.memory_space<any>>
    %c0_i32_2 = arith.constant 0 : i32
    %c0_i32_3 = arith.constant 0 : i32
    %1 = tpu.memref_slice %arg1[%c0_i32_2, %c0_i32_3] : memref<1x2048xf32, #tpu.memory_space<any>> -> memref<1x2048xf32, #tpu.memory_space<any>>
    %2 = tpu.memref_slice %arg2[%c0_i32] : memref<1x!tpu.dma_semaphore, #tpu.memory_space<semaphore_mem>> -> memref<1x!tpu.dma_semaphore, #tpu.memory_space<semaphore_mem>>
    %3 = tpu.memref_squeeze %2 : memref<1x!tpu.dma_semaphore, #tpu.memory_space<semaphore_mem>> -> memref<!tpu.dma_semaphore, #tpu.memory_space<semaphore_mem>>
    tpu.enqueue_dma source(%0 : memref<1x2048xf32, #tpu.memory_space<any>>) target(%1 : memref<1x2048xf32, #tpu.memory_space<any>>) target_semaphore(%3 : memref<!tpu.dma_semaphore, #tpu.memory_space<semaphore_mem>>)
    %c0_i32_4 = arith.constant 0 : i32
    %c0_i32_5 = arith.constant 0 : i32
    %c0_i32_6 = arith.constant 0 : i32
    %4 = tpu.memref_slice %arg0[%c0_i32_5, %c0_i32_6] : memref<1x2048xf32, #tpu.memory_space<any>> -> memref<1x2048xf32, #tpu.memory_space<any>>
    %c0_i32_7 = arith.constant 0 : i32
    %c0_i32_8 = arith.constant 0 : i32
    %5 = tpu.memref_slice %arg1[%c0_i32_7, %c0_i32_8] : memref<1x2048xf32, #tpu.memory_space<any>> -> memref<1x2048xf32, #tpu.memory_space<any>>
    %6 = tpu.memref_slice %arg2[%c0_i32_4] : memref<1x!tpu.dma_semaphore, #tpu.memory_space<semaphore_mem>> -> memref<1x!tpu.dma_semaphore, #tpu.memory_space<semaphore_mem>>
    %7 = tpu.memref_squeeze %6 : memref<1x!tpu.dma_semaphore, #tpu.memory_space<semaphore_mem>> -> memref<!tpu.dma_semaphore, #tpu.memory_space<semaphore_mem>>
    tpu.wait_dma2 semaphore(%7 : memref<!tpu.dma_semaphore, #tpu.memory_space<semaphore_mem>>) src(%4 : memref<1x2048xf32, #tpu.memory_space<any>>) dst(%5 : memref<1x2048xf32, #tpu.memory_space<any>>)
    return
  }
}

</mosaic_0001>

<bundles_post_ra>
// kernel: tpu_custom_call.1
= control target key start
LH: loop header
LB: loop body
LE: loop exit
PB: predicated region body
PF: predicated region fallthrough
CT: control target
= control target key end

     0   :  { %s28_s6 = smov [#allocation2]   ;;  %s29_s7 = smov 131072   ;;  %s47_s0 = inlined_call_operand.hbm [shape: f32[1,2048], index: 0, kind: input, shape index: {}]   ;;  %s48_s1 = inlined_call_operand.hbm [shape: f32[1,2048], index: 1, kind: output, shape index: {}]  }
   0x1   :  { %s30_s8 = smov 0  }
   0x2   :  { %12 = dma.general %s47_s0, 256, %s48_s1, %s28_s6, %s29_s7, [#allocation4], %s30_s8, 0  }
   0x3   :  { %26 = dma.done.wait [#allocation2], 256 }
   0x4   :  { %27 = vsyncadd [#allocation2], 4294967040 }
   0x5   :  { %16 = vsyncmov [#allocation2] }
   0x8   :  { %s17_s13 = vpop.sfrf %16 }
   0x9   :  { %p22_p0 = scmp.ne.s32.totalorder %s17_s13, 0 }
   0xb   :  { %21 = shalt.err (%p22_p0)  }

</bundles_post_ra>
